<compile_context>
chip_gen: v5e
topology: v5e:2x2
jax: 0.10.0
libtpu: 0.0.40
codegen_flags: <defaults>
</compile_context>

<pallas_src>
import jax
import jax.numpy as jnp
from jax.experimental import pallas as pl
from jax.experimental.pallas import tpu as pltpu


def _cdiv(a, b):
    return -(-a // b)


def _norm_kernel(mean_ref, inv_std_ref, img_ref, out_ref):
    rb = img_ref.shape[0]
    if mean_ref.shape[0] == rb:
        # Stats block matches the img row block (blocked fallback, or a
        # single row block).
        m = mean_ref[...]
        inv = inv_std_ref[...]
    else:
        # Stats are fully VMEM-resident: slice this block's rows.  rb is a
        # multiple of the sublane packing, so the dynamic start stays aligned.
        r0 = pl.multiple_of(pl.program_id(0) * rb, rb)
        m = mean_ref[pl.ds(r0, rb), :]
        inv = inv_std_ref[pl.ds(r0, rb), :]
    # f32 math everywhere (correct on v5e which has no bf16 VALU; HBM-bound,
    # so the VALU cost is hidden anyway).
    x = img_ref[...].astype(jnp.float32)
    out_ref[...] = ((x - m) * inv).astype(out_ref.dtype)


def _choose_tiles(rows, cols, in_itemsize, out_itemsize,
                  *, target_bytes=4 << 20, min_steps=4):
    """Pick (rb, cb): (8,128)-legal, ~target_bytes per img tile."""
    itemsize = max(in_itemsize, out_itemsize)
    # Sublane packing of the narrowest dtype: 8 (f32) / 16 (bf16) / 32 (int8).
    sub = max(8, 32 // max(1, min(in_itemsize, out_itemsize)))
    lane = 128
    lane_cols = _cdiv(cols, lane) * lane          # lanes occupied in VMEM

    # Column (lane) blocking only when `sub` full-width rows already overflow.
    if sub * lane_cols * itemsize > target_bytes:
        cb = max(lane, (target_bytes // (sub * itemsize)) // lane * lane)
        cb = min(cb, lane_cols)
    else:
        cb = cols                                 # full width -> lane-dense
    cb_lanes = _cdiv(min(cb, cols), lane) * lane

    if rows <= sub:
        rb = rows                                 # full dim -> always legal
    else:
        rb = max(sub, (target_bytes // (cb_lanes * itemsize)) // sub * sub)
        rb = min(rb, _cdiv(rows, sub) * sub)
        # Keep >= min_steps grid steps (2 TensorCores on v7x x double buffer)
        # when the problem is big enough to amortize per-step overhead.
        total_bytes = rows * lane_cols * itemsize
        if (total_bytes >= min_steps * (1 << 20)
                and _cdiv(rows, rb) * _cdiv(cols, cb) < min_steps):
            rb = max(sub, _cdiv(_cdiv(rows, min_steps), sub) * sub)
    return rb, cb


def normalization(img, mean, std):
    """(img - mean[:, None, None]) / std[:, None, None] for an NCHW img."""
    N, C, H, W = img.shape
    rows, cols = N * C, H * W

    # Stats stay float32; reciprocal is O(C) wrapper work instead of an
    # O(N*C*H*W) in-kernel division.
    mean_f32 = jnp.asarray(mean, dtype=jnp.float32).reshape(C)
    inv_std_f32 = 1.0 / jnp.asarray(std, dtype=jnp.float32).reshape(C)
    mean_rows = jnp.tile(mean_f32, N).reshape(rows, 1)
    inv_std_rows = jnp.tile(inv_std_f32, N).reshape(rows, 1)

    # PyTorch promotes against the float32 buffers (bf16 img -> f32 out).
    out_dtype = jnp.promote_types(img.dtype, jnp.float32)

    img2d = img.reshape(rows, cols)               # lane-dense flattening

    in_it = jnp.dtype(img.dtype).itemsize
    out_it = jnp.dtype(out_dtype).itemsize
    rb, cb = _choose_tiles(rows, cols, in_it, out_it)

    n_row_blocks = _cdiv(rows, rb)
    n_col_blocks = _cdiv(cols, cb)
    rows_padded = n_row_blocks * rb

    # Keep mean / 1/std fully VMEM-resident (constant block index => no
    # per-step micro-DMA + semaphore waits) unless there are so many rows that
    # the lane-padded (rows, 1) copies would waste real VMEM; then fall back
    # to one tiny per-row-block DMA.
    stats_resident = rows_padded <= 1024
    if stats_resident:
        pad = rows_padded - rows
        if pad:
            mean_rows = jnp.pad(mean_rows, ((0, pad), (0, 0)))
            inv_std_rows = jnp.pad(inv_std_rows, ((0, pad), (0, 0)),
                                   constant_values=1.0)
        stat_spec = pl.BlockSpec((rows_padded, 1), lambda i, j: (0, 0))
    else:
        stat_spec = pl.BlockSpec((rb, 1), lambda i, j: (i, 0))

    # VMEM budget: img + out, each double-buffered, plus small stats copies.
    tile_bytes = rb * _cdiv(min(cb, cols), 128) * 128 * max(in_it, out_it)
    vmem_limit = int(min(64 << 20, max(32 << 20, 4 * tile_bytes + (4 << 20))))

    out2d = pl.pallas_call(
        _norm_kernel,
        out_shape=jax.ShapeDtypeStruct((rows, cols), out_dtype),
        grid=(n_row_blocks, n_col_blocks),
        in_specs=[
            stat_spec,                                    # mean   (f32)
            stat_spec,                                    # 1/std  (f32)
            pl.BlockSpec((rb, cb), lambda i, j: (i, j)),  # img tile
        ],
        out_specs=pl.BlockSpec((rb, cb), lambda i, j: (i, j)),
        compiler_params=pltpu.CompilerParams(
            dimension_semantics=("parallel", "parallel"),
            vmem_limit_bytes=vmem_limit,
        ),
    )(mean_rows, inv_std_rows, img2d)

    return out2d.reshape(N, C, H, W)


if __name__ == "__main__":
    key = jax.random.PRNGKey(0)
    N, C, H, W = 2, 4, 16, 16

    img = jax.random.normal(key, (N, C, H, W), dtype=jnp.float32)
    # Deterministic per-channel statistics (module __init__ takes mean/std).
    mean = [0.485, 0.456, 0.406, 0.5]
    std = [0.229, 0.224, 0.225, 0.25]

    out = normalization(img, mean, std)
    out = jax.block_until_ready(out)

    # Reference check against the PyTorch forward semantics.
    mean_a = jnp.asarray(mean, jnp.float32).reshape(C, 1, 1)
    std_a = jnp.asarray(std, jnp.float32).reshape(C, 1, 1)
    ref = (img - mean_a) / std_a
    assert out.shape == (N, C, H, W)
    assert out.dtype == jnp.float32
    assert jnp.allclose(out, ref, atol=1e-5, rtol=1e-5)

    print("KERNEL_OK")
</pallas_src>

<mosaic_0001>
module attributes {stable_mosaic.version = 11 : i64} {
  func.func @_norm_kernel(%arg0: i32, %arg1: i32, %arg2: memref<8x1xf32, #tpu.memory_space<vmem>>, %arg3: memref<8x1xf32, #tpu.memory_space<vmem>>, %arg4: memref<8x256xf32, #tpu.memory_space<vmem>>, %arg5: memref<8x256xf32, #tpu.memory_space<vmem>>) attributes {dimension_semantics = [#tpu.dimension_semantics<parallel>, #tpu.dimension_semantics<parallel>], iteration_bounds = array<i64: 1, 1>, scalar_prefetch = 0 : i64, scratch_operands = 0 : i64, tpu.core_type = #tpu.core_type<tc>, window_params = [{pipeline_mode = #tpu.pipeline_mode<synchronous>, transform_indices = @transform_0, window_bounds = array<i64: 8, 1>}, {pipeline_mode = #tpu.pipeline_mode<synchronous>, transform_indices = @transform_1, window_bounds = array<i64: 8, 1>}, {transform_indices = @transform_2, window_bounds = array<i64: 8, 256>}, {transform_indices = @transform_3, window_bounds = array<i64: 8, 256>}]} {
    %c0 = arith.constant 0 : index
    %c0_0 = arith.constant 0 : index
    %0 = vector.load %arg2[%c0, %c0_0] : memref<8x1xf32, #tpu.memory_space<vmem>>, vector<8x1xf32>
    %c0_1 = arith.constant 0 : index
    %c0_2 = arith.constant 0 : index
    %1 = vector.load %arg3[%c0_1, %c0_2] : memref<8x1xf32, #tpu.memory_space<vmem>>, vector<8x1xf32>
    %c0_3 = arith.constant 0 : index
    %c0_4 = arith.constant 0 : index
    %2 = vector.load %arg4[%c0_3, %c0_4] : memref<8x256xf32, #tpu.memory_space<vmem>>, vector<8x256xf32>
    %3 = vector.broadcast %0 : vector<8x1xf32> to vector<8x256xf32>
    %4 = arith.subf %2, %3 : vector<8x256xf32>
    %5 = vector.broadcast %1 : vector<8x1xf32> to vector<8x256xf32>
    %6 = arith.mulf %4, %5 : vector<8x256xf32>
    %c0_5 = arith.constant 0 : index
    %c0_6 = arith.constant 0 : index
    %7 = vector.load %arg5[%c0_5, %c0_6] : memref<8x256xf32, #tpu.memory_space<vmem>>, vector<8x256xf32>
    tpu.vector_store %arg5[%c0_5, %c0_6], %6 {strides = array<i32>} : memref<8x256xf32, #tpu.memory_space<vmem>>, vector<8x256xf32>,
    return
  }
  func.func @transform_0(%arg0: i32, %arg1: i32) -> (i32, i32) {
    %c0_i32 = arith.constant 0 : i32
    %c0_i32_0 = arith.constant 0 : i32
    %c0_i32_1 = arith.constant 0 : i32
    return %c0_i32, %c0_i32_0 : i32, i32
  }
  func.func @transform_1(%arg0: i32, %arg1: i32) -> (i32, i32) {
    %c0_i32 = arith.constant 0 : i32
    %c0_i32_0 = arith.constant 0 : i32
    %c0_i32_1 = arith.constant 0 : i32
    return %c0_i32, %c0_i32_0 : i32, i32
  }
  func.func @transform_2(%arg0: i32, %arg1: i32) -> (i32, i32) {
    %c0_i32 = arith.constant 0 : i32
    return %arg0, %arg1 : i32, i32
  }
  func.func @transform_3(%arg0: i32, %arg1: i32) -> (i32, i32) {
    %c0_i32 = arith.constant 0 : i32
    return %arg0, %arg1 : i32, i32
  }
}

</mosaic_0001>

<bundles_post_ra>
// kernel: tpu_custom_call.1
= control target key start
LH: loop header
LB: loop body
LE: loop exit
PB: predicated region body
PF: predicated region fallthrough
CT: control target
= control target key end

     0   :  { %v80_v1 = vmov 0   ;;  %s117_s0 = inlined_call_operand.vmem [shape: f32[8,1], index: 0, kind: input, shape index: {}]   ;;  %s118_s1 = inlined_call_operand.vmem [shape: f32[8,1], index: 1, kind: input, shape index: {}]   ;;  %s119_s2 = inlined_call_operand.vmem [shape: f32[8,256], index: 2, kind: input, shape index: {}]   ;;  %s120_s3 = inlined_call_operand.hbm [shape: f32[8,256], index: 3, kind: output, shape index: {}]  }
   0x1   :  { %v15_v0 = vld [vmem:[%s117_s0] sm:$0xff]  ;;  %53 = vset.pattern.permute.xlu0 %v80_v1 }
   0x2   :  { %8 = vsyncpa [#allocation3], 0  ;;  %21 = vperm.xlu0 %53, %v15_v0   ;;  %v16_v2 = vld [vmem:[%s118_s1] sm:$0xff]  ;;  %v18_v5 = vld [vmem:[%s119_s2 + $0x8] sm:$0xff]  ;;  %s81_s0 = smov [#allocation2]   ;;  %s42_s23 = sshll.u32 %s120_s3, 4  ;;  %s43_s23 = int_to_ptr.hbm [resolvable:$true] %s42_s23 }
   0x3   :  { %v17_v4 = vld [vmem:[%s119_s2] sm:$0xff]  ;;  %s40_s20 = sshll.u32 %s81_s0, 4  ;;  %s41_s20 = int_to_ptr.vmem [resolvable:$true] %s40_s20 }
   0xa   :  { %28 = vperm.xlu0 %53, %v16_v2  }
  0x74   :  { %v22_v3 = vpop.permute.xlu0 %21 }
  0x75   :  { %v24_v6 = vsub.f32 %v17_v4, %v22_v3  ;;  %v25_v7 = vsub.f32 %v18_v5, %v22_v3 }
  0x7c   :  { %v29_v8 = vpop.permute.xlu0 %28 }
  0x7d   :  { %v31_v9 = vmul.f32 %v29_v8, %v24_v6  ;;  %v32_v10 = vmul.f32 %v29_v8, %v25_v7 }
  0x7f   :  { %33 = vst [vmem:[#allocation2] sm:$0xff] %v31_v9 }
  0x80   :  { %34 = vst [vmem:[#allocation2 + $0x8] sm:$0xff] %v32_v10 }
  0x81   :  { %45 = dma.vmem_to_hbm [thread:$0]  %s41_s20, 256, %s43_s23, [#allocation3]  }
  0x82   :  { %78 = dma.done.wait [#allocation3], 256  }
  0x83   :  { %79 = vsyncadd [#allocation3], 4294967040 }
  0x84   :  { %50 = vsyncpa [#allocation3], 1 }

</bundles_post_ra>
